<compile_context>
chip_gen: v6e
topology: v6e:2x2x1
jax: 0.10.0
libtpu: 0.0.40
codegen_flags: <defaults>
</compile_context>

<pallas_src>
from functools import lru_cache

import numpy as np
import jax
import jax.numpy as jnp
from jax.experimental import pallas as pl
from jax.experimental.pallas import tpu as pltpu

# ---- problem sizes (small, consistent with the module's docstring) ----------
N = 8                   # num_nodes
C = 8                   # in_channels (node feature dim)
R = 4                   # rows of edge_attr ("number_relations")
F = 16                  # edge_attr feature dim
E = N * (N - 1)         # num directed edges (off-diagonal pairs) = 56

LANE = 128              # TPU lane width


@lru_cache(maxsize=None)
def _build_rel_block(num_nodes):
    """Dense one-hot [rel_send | rel_rec] block, built ONCE per N (host numpy)."""
    off_diag = np.ones((num_nodes, num_nodes), np.float32) - np.eye(
        num_nodes, dtype=np.float32)
    rows, cols = np.where(off_diag)                 # row-major edge order
    eye = np.eye(num_nodes, dtype=np.float32)
    rel_rec = eye[rows]                             # [E, N]
    rel_send = eye[cols]                            # [E, N]
    return np.concatenate([rel_send, rel_rec], axis=-1)   # [E, 2N]


# ---- Pallas kernel: one fused MXU dot, one full-width unmasked store --------
def _rgcn_kernel(lhs_ref, rhs_ref, out_ref):
    out_ref[...] = jnp.dot(lhs_ref[...], rhs_ref[...],
                           preferred_element_type=jnp.float32)


def _forward_impl(inputs, edge_attr, global_attr):
    """RGCNConv3_xi.forward: returns (output, edges, globals)."""
    n, c = inputs.shape
    r, f = edge_attr.shape
    e = n * (n - 1)
    assert global_attr.shape == (e, r), "global_attr must be [E, R]"

    gcol = 2 * c + f                                # edge feature width (32)
    k = 2 * n + r + c                               # fused contraction dim (28)
    slab_w = ((gcol + 1 + LANE - 1) // LANE) * LANE  # lane-dense slab width (128)
    pad = slab_w - (gcol + 1)

    f32 = jnp.float32
    inputs = inputs.astype(f32)
    edge_attr = edge_attr.astype(f32)
    global_attr = global_attr.astype(f32)

    rel_block = jnp.asarray(_build_rel_block(n))    # [E, 2N] cached jit constant

    # ---- fused LHS [E+N, K] --------------------------------------------------
    lhs_edge = jnp.concatenate(
        [rel_block, global_attr, jnp.zeros((e, c), f32)], axis=-1)        # [E, K]
    lhs_node = jnp.concatenate(
        [jnp.zeros((n, 2 * n + r), f32), inputs], axis=-1)                # [N, K]
    lhs = jnp.concatenate([lhs_edge, lhs_node], axis=0)                   # [E+N, K]

    # ---- fused RHS [K, 128]: blockdiag(x, x, edge_attr) + mean column --------
    inv_g = f32(1.0 / gcol)
    inv_c = f32(1.0 / c)
    x_rsum = jnp.sum(inputs, axis=-1, keepdims=True) * inv_g              # [N, 1]
    e_rsum = jnp.sum(edge_attr, axis=-1, keepdims=True) * inv_g           # [R, 1]

    rhs_send = jnp.concatenate(                                           # rows 0:N
        [inputs, jnp.zeros((n, c + f), f32), x_rsum,
         jnp.zeros((n, pad), f32)], axis=-1)
    rhs_recv = jnp.concatenate(                                           # rows N:2N
        [jnp.zeros((n, c), f32), inputs, jnp.zeros((n, f), f32), x_rsum,
         jnp.zeros((n, pad), f32)], axis=-1)
    rhs_glob = jnp.concatenate(                                           # rows 2N:2N+R
        [jnp.zeros((r, 2 * c), f32), edge_attr, e_rsum,
         jnp.zeros((r, pad), f32)], axis=-1)
    rhs_node = jnp.concatenate(                                           # rows 2N+R:K
        [jnp.zeros((c, gcol), f32), jnp.full((c, 1), inv_c, f32),
         jnp.zeros((c, pad), f32)], axis=-1)
    rhs = jnp.concatenate([rhs_send, rhs_recv, rhs_glob, rhs_node], axis=0)  # [K, 128]

    vmem = pl.BlockSpec(memory_space=pltpu.MemorySpace.VMEM)
    slab = pl.pallas_call(
        _rgcn_kernel,
        out_shape=jax.ShapeDtypeStruct((e + n, slab_w), jnp.float32),
        in_specs=[vmem, vmem],
        out_specs=vmem,
    )(lhs, rhs)

    edges = slab[:e, :gcol]                         # [E, 2C+F]
    globals_ = slab[:, gcol:gcol + 1]               # [E+N, 1] (edge means; node means)
    output = inputs                                 # all2nodes is identity
    return output, edges, globals_


rgcn_conv3_xi_forward = jax.jit(_forward_impl)


# ---- pure-JAX reference for verification ------------------------------------
def _reference(inputs, edge_attr, global_attr):
    n = inputs.shape[0]
    rel_block = np.asarray(_build_rel_block(n))
    rel_send = jnp.asarray(rel_block[:, :n])
    rel_rec = jnp.asarray(rel_block[:, n:])
    receivers = rel_rec @ inputs
    senders = rel_send @ inputs
    edges_n = jnp.concatenate([senders, receivers], axis=-1)
    edges_g = global_attr @ edge_attr
    edges = jnp.concatenate([edges_n, edges_g], axis=-1)
    g_attr_n = jnp.mean(inputs, axis=1, keepdims=True)
    g_attr_e = jnp.mean(edges, axis=1, keepdims=True)
    globals_ = jnp.concatenate([g_attr_e, g_attr_n], axis=0)
    return inputs, edges, globals_


if __name__ == "__main__":
    key = jax.random.PRNGKey(0)
    k1, k2, k3 = jax.random.split(key, 3)
    inputs = jax.random.normal(k1, (N, C), dtype=jnp.float32)        # node_attr
    edge_attr = jax.random.normal(k2, (R, F), dtype=jnp.float32)     # edge_attr
    global_attr = jax.random.normal(k3, (E, R), dtype=jnp.float32)   # global_attr

    out, edges, globals_ = jax.block_until_ready(
        rgcn_conv3_xi_forward(inputs, edge_attr, global_attr))

    ref_out, ref_edges, ref_globals = _reference(inputs, edge_attr, global_attr)
    np.testing.assert_allclose(np.asarray(out), np.asarray(ref_out),
                               rtol=1e-5, atol=1e-5)
    np.testing.assert_allclose(np.asarray(edges), np.asarray(ref_edges),
                               rtol=1e-5, atol=1e-5)
    np.testing.assert_allclose(np.asarray(globals_), np.asarray(ref_globals),
                               rtol=1e-5, atol=1e-5)
    print("KERNEL_OK")
</pallas_src>

<mosaic_0001>
module attributes {stable_mosaic.version = 11 : i64} {
  func.func @_rgcn_kernel(%arg0: memref<64x28xf32, #tpu.memory_space<vmem>>, %arg1: memref<28x128xf32, #tpu.memory_space<vmem>>, %arg2: memref<64x128xf32, #tpu.memory_space<vmem>>) attributes {dimension_semantics = [], scalar_prefetch = 0 : i64, scratch_operands = 0 : i64, tpu.core_type = #tpu.core_type<tc>} {
    %c0 = arith.constant 0 : index
    %c0_0 = arith.constant 0 : index
    %0 = vector.load %arg0[%c0, %c0_0] : memref<64x28xf32, #tpu.memory_space<vmem>>, vector<64x28xf32>
    %c0_1 = arith.constant 0 : index
    %c0_2 = arith.constant 0 : index
    %1 = vector.load %arg1[%c0_1, %c0_2] : memref<28x128xf32, #tpu.memory_space<vmem>>, vector<28x128xf32>
    %cst = arith.constant dense<0.000000e+00> : vector<64x128xf32>
    %2 = tpu.matmul %0, %1, %cst {dimension_numbers = #tpu.dot_dimension_numbers<[1], [0], [0], [1], [0, 0, 1, 1], [], []>} : vector<64x28xf32>, vector<28x128xf32>, vector<64x128xf32> -> vector<64x128xf32>
    %c0_3 = arith.constant 0 : index
    %c0_4 = arith.constant 0 : index
    %3 = vector.load %arg2[%c0_3, %c0_4] : memref<64x128xf32, #tpu.memory_space<vmem>>, vector<64x128xf32>
    tpu.vector_store %arg2[%c0_3, %c0_4], %2 {strides = array<i32>} : memref<64x128xf32, #tpu.memory_space<vmem>>, vector<64x128xf32>,
    return
  }
}

</mosaic_0001>

<bundles_post_ra>
// kernel: _forward_impl.1
= control target key start
LH: loop header
LB: loop body
LE: loop exit
PB: predicated region body
PF: predicated region fallthrough
CT: control target
= control target key end

     0   :  { %vm48_vm0 = vcmask 1043456   ;;  %vm23_vm1 = vcmask 228352   ;;  %s301_s1 = inlined_call_operand.vmem [shape: f32[28,128], index: 1, kind: input, shape index: {}]   ;;  %s302_s0 = inlined_call_operand.vmem [shape: f32[64,28], index: 0, kind: input, shape index: {}]   ;;  %s303_s2 = inlined_call_operand.vmem [shape: f32[64,128], index: 2, kind: output, shape index: {}]  }
   0x1   :  { %v22_v0 = vld [vmem:[%s301_s1 + $0x18] sm:$0xf]  ;;  %v21_v1 = vld [vmem:[%s301_s1 + $0x10] sm:$0xff]  ;;  %v20_v2 = vld [vmem:[%s301_s1 + $0x8] sm:$0xff] }
   0x2   :  { %190 = vmatprep.subr.msk.mxu0 %vm48_vm0, %v22_v0  ;;  %210 = vmatprep.subr.msk.mxu1 %vm48_vm0, %v22_v0  ;;  %v19_v3 = vld [vmem:[%s301_s1] sm:$0xff]  ;;  %v12_v6 = vld [vmem:[%s302_s0 + $0x8] sm:$0xff]  ;;  %v13_v8 = vld [vmem:[%s302_s0 + $0x10] sm:$0xff] }
   0x3   :  { %191 = vmatpush3.msk.msra.mxu0 %vm48_vm0, %v22_v0  ;;  %214 = vmatpush3.msk.msra.mxu1 %vm48_vm0, %v22_v0  ;;  %v11_v4 = vld [vmem:[%s302_s0] sm:$0xff]  ;;  %v16_v7 = vld [vmem:[%s302_s0 + $0x28] sm:$0xff]  ;;  %v17_v9 = vld [vmem:[%s302_s0 + $0x30] sm:$0xff] }
   0x4   :  { %192 = vmatprep.subr.mxu0 %v21_v1  ;;  %211 = vmatprep.subr.mxu1 %v21_v1  ;;  %v15_v5 = vld [vmem:[%s302_s0 + $0x20] sm:$0xff]  ;;  %v14_v10 = vld [vmem:[%s302_s0 + $0x18] sm:$0xff] }
   0x5   :  { %193 = vmatpush3.msra.mxu0 %v21_v1  ;;  %215 = vmatpush3.msra.mxu1 %v21_v1  ;;  %v18_v11 = vld [vmem:[%s302_s0 + $0x38] sm:$0xff] }
   0x6   :  { %194 = vmatprep.subr.mxu0 %v20_v2  ;;  %212 = vmatprep.subr.mxu1 %v20_v2 }
   0x7   :  { %195 = vmatpush3.msra.mxu0 %v20_v2  ;;  %216 = vmatpush3.msra.mxu1 %v20_v2 }
   0x8   :  { %196 = vmatprep.subr.mxu0 %v19_v3  ;;  %213 = vmatprep.subr.mxu1 %v19_v3 }
   0x9   :  { %197 = vmatpush3.msra.mxu0 %v19_v3  ;;  %217 = vmatpush3.msra.mxu1 %v19_v3 }
   0xa   :  { %198 = vmatprep.mubr.msk.f32.mxu0 %vm23_vm1, %v11_v4  ;;  %204 = vmatprep.mubr.msk.f32.mxu1 %vm23_vm1, %v15_v5 }
   0xb   :  { %199 = vmatmul.mubr.msk.f32.vlgmr.msra.gmra.mxu0 %vm23_vm1, %v12_v6  ;;  %205 = vmatmul.mubr.msk.f32.vlgmr.msra.gmra.mxu1 %vm23_vm1, %v16_v7 }
   0xc   :  { %201 = vmatprep.mubr.msk.f32.mxu0 %vm23_vm1, %v13_v8  ;;  %207 = vmatprep.mubr.msk.f32.mxu1 %vm23_vm1, %v17_v9 }
   0xf   :  { %202 = vmatmul.mubr.msk.f32.gmra.mxu0 %vm23_vm1, %v14_v10  ;;  %208 = vmatmul.mubr.msk.f32.gmra.mxu1 %vm23_vm1, %v18_v11 }
  0xcb   :  { %v200_v12 = vpop.f32.mrf.mxu0  ;;  %v206_v13 = vpop.f32.mrf.mxu1 }
  0xcc   :  { %158 = vst [vmem:[%s303_s2 + $0x8] sm:$0xff] %v200_v12  ;;  %162 = vst [vmem:[%s303_s2 + $0x28] sm:$0xff] %v206_v13 }
  0xcd   :  { %v118_v14 = vpop.f32.mrf.mxu0  ;;  %v138_v15 = vpop.f32.mrf.mxu1 }
  0xce   :  { %157 = vst [vmem:[%s303_s2] sm:$0xff] %v118_v14  ;;  %161 = vst [vmem:[%s303_s2 + $0x20] sm:$0xff] %v138_v15 }
  0xcf   :  { %v203_v16 = vpop.f32.mrf.mxu0  ;;  %v209_v17 = vpop.f32.mrf.mxu1 }
  0xd0   :  { %160 = vst [vmem:[%s303_s2 + $0x18] sm:$0xff] %v203_v16  ;;  %164 = vst [vmem:[%s303_s2 + $0x38] sm:$0xff] %v209_v17 }
  0xd1   :  { %v128_v18 = vpop.f32.mrf.mxu0  ;;  %v148_v19 = vpop.f32.mrf.mxu1 }
  0xd2   :  { %159 = vst [vmem:[%s303_s2 + $0x10] sm:$0xff] %v128_v18  ;;  %163 = vst [vmem:[%s303_s2 + $0x30] sm:$0xff] %v148_v19 }

</bundles_post_ra>
